<compile_context>
chip_gen: v7x
topology: tpu7x:2x2x1
jax: 0.10.0
libtpu: 0.0.40
codegen_flags: <defaults>
</compile_context>

<pallas_src>
import functools

import jax
import jax.numpy as jnp
from jax.experimental import pallas as pl
from jax.experimental.pallas import tpu as pltpu

# ----------------------- model hyper-parameters (MrT5Config) -----------------
D_MODEL = 32          # config.d_model
D_KV = 8              # config.d_kv
N_HEADS = 4           # config.num_heads
INNER_DIM = N_HEADS * D_KV
LN_EPS = 1e-6         # config.layer_norm_epsilon
# dropout_rate irrelevant at inference; use_softmax1=False; cross-attention has
# no relative attention bias.

LQ = 8                # decoder (query) length
LK = 16               # encoder (key/value) length
BATCH = 2


def _cross_attn_kernel(hid_ref, kv_ref, bias_ref, w_ref, out_ref,
                       *, b, lq, lk, n_heads, d_kv):
    """Whole layer in one shot (no grid).

    hid_ref  : (B*Lq, D)   f32  hidden states (residual + LN input)
    kv_ref   : (B*Lk, D)   f32  encoder states (keys/values side)
    bias_ref : (B, Lk)     f32  attention_mask + delete_gate_mask (additive)
    w_ref    : (D, 4*inner) bf16 lane-dense slab [ln*Wq | Wk | Wv | Wo]
    out_ref  : (B*Lq, D)        layer output (aliased with hid_ref's buffer)
    """
    inner = n_heads * d_kv

    hid = hid_ref[...]                                   # (B*Lq, D) f32
    kv = kv_ref[...]                                     # (B*Lk, D) f32
    w = w_ref[...]                                       # (D, 128) bf16
    wq = w[:, :inner]                                    # (D, inner)   (ln folded)
    wkv = w[:, inner:3 * inner]                          # (D, 2*inner) [Wk | Wv]
    wo = w[:, 3 * inner:]                                # (inner, D)

    # --- T5LayerNorm (RMS, fp32). The elementwise LN weight is folded into Wq
    # in the wrapper (exact: normed feeds only the Q projection here). ---
    var = jnp.mean(hid * hid, axis=-1, keepdims=True)
    normed = hid * jax.lax.rsqrt(var + LN_EPS)           # (B*Lq, D) f32

    # --- full-width projections: two 2-D matmuls, bf16 operands, f32 acc ---
    q2 = jnp.dot(normed.astype(jnp.bfloat16), wq,
                 preferred_element_type=jnp.float32)     # (B*Lq, inner)
    kvp = jnp.dot(kv.astype(jnp.bfloat16), wkv,
                  preferred_element_type=jnp.float32)    # (B*Lk, 2*inner)

    # --- head split: static lane slices + major-axis concat -> (H*B, L, dkv).
    # Small relayout only (XLU/VALU); the MXU push count stays minimal. ---
    def split_heads(x2, base, length):
        pieces = [x2[:, base + h * d_kv: base + (h + 1) * d_kv]
                  .reshape(b, length, d_kv) for h in range(n_heads)]
        return jnp.concatenate(pieces, axis=0).astype(jnp.bfloat16)

    q3 = split_heads(q2, 0, lq)                          # (H*B, Lq, dkv)
    k3 = split_heads(kvp, 0, lk)                         # (H*B, Lk, dkv)
    v3 = split_heads(kvp, inner, lk)                     # (H*B, Lk, dkv)

    # --- scores, single additive bias, fp32 softmax (exact divide) ---
    scores = jnp.einsum('bqd,bkd->bqk', q3, k3,
                        preferred_element_type=jnp.float32)   # (H*B, Lq, Lk)
    bias3 = jnp.broadcast_to(bias_ref[...][:, None, :], (b, lq, lk))
    scores = scores + jnp.concatenate([bias3] * n_heads, axis=0)
    m = jnp.max(scores, axis=-1, keepdims=True)
    e = jnp.exp(scores - m)
    p = e / jnp.sum(e, axis=-1, keepdims=True)

    attn3 = jnp.einsum('bqk,bkd->bqd', p.astype(jnp.bfloat16), v3,
                       preferred_element_type=jnp.float32)    # (H*B, Lq, dkv)

    # --- merge heads back into lanes, then ONE output projection over the
    # fused head*d_kv axis (MXU reduces over heads for free), residual add ---
    attn2 = jnp.concatenate(
        [attn3[h * b:(h + 1) * b].reshape(b * lq, d_kv) for h in range(n_heads)],
        axis=-1)                                              # (B*Lq, inner)
    out2 = jnp.dot(attn2.astype(jnp.bfloat16), wo,
                   preferred_element_type=jnp.float32)        # (B*Lq, D)

    out_ref[...] = (hid + out2).astype(out_ref.dtype)


def mrt5_layer_cross_attention(hidden_states, key_value_states,
                               attention_mask, delete_gate_mask, params):
    """Matches MrT5LayerCrossAttention.forward (eval, use_cache=False,
    output_attentions=False, output_attn_logs=False): returns
    (layer_output, present_key_value_state, position_bias)."""
    B, Lq, D = hidden_states.shape
    Lk = key_value_states.shape[1]
    H, dkv = N_HEADS, D_KV
    inner = H * dkv

    # ---- wrapper-side layout plumbing (one-time, plain XLA) ----
    hid2 = hidden_states.reshape(B * Lq, D)
    kv2 = key_value_states.reshape(B * Lk, D)

    # fused additive bias = extended attention mask + delete-gate mask, (B, Lk);
    # broadcast to (H*B, Lq, Lk) happens inside the kernel (free vreg copies).
    bias = (attention_mask.reshape(B, Lk) +
            delete_gate_mask.reshape(B, Lk)).astype(jnp.float32)

    # single lane-dense bf16 weight slab: [ln*Wq | Wk | Wv | Wo] -> (D, 4*inner)
    # = (32, 128). T5LayerNorm weight folded into Wq (exact reassociation).
    wq_folded = params["ln_w"].reshape(D, 1) * params["wq"]          # (D, inner)
    w_slab = jnp.concatenate(
        [wq_folded, params["wk"], params["wv"], params["wo"]],
        axis=-1).astype(jnp.bfloat16)                                # (32, 128)

    kernel = functools.partial(_cross_attn_kernel, b=B, lq=Lq, lk=Lk,
                               n_heads=H, d_kv=dkv)

    flops = (2 * B * Lq * D * inner            # Q projection
             + 2 * B * Lk * D * (2 * inner)    # fused K|V projection
             + 2 * B * H * Lq * Lk * dkv * 2   # scores + P@V
             + 2 * B * Lq * inner * D)         # output projection
    transcendentals = B * H * Lq * Lk + B * Lq
    bytes_accessed = (hid2.size + kv2.size + bias.size + B * Lq * D) * 4 \
                     + w_slab.size * 2

    vmem = pl.BlockSpec(memory_space=pltpu.MemorySpace.VMEM)
    out_flat = pl.pallas_call(
        kernel,
        out_shape=jax.ShapeDtypeStruct((B * Lq, D), hidden_states.dtype),
        in_specs=[vmem] * 4,
        out_specs=vmem,
        input_output_aliases={0: 0},   # residual output reuses hid2's buffer
        cost_estimate=pl.CostEstimate(flops=flops,
                                      transcendentals=transcendentals,
                                      bytes_accessed=bytes_accessed),
    )(hid2, kv2, bias, w_slab)

    layer_output = out_flat.reshape(B, Lq, D)

    # module outputs: position_bias = zeros (no relative bias) + attention mask
    position_bias = jnp.zeros((1, H, Lq, Lk), hidden_states.dtype) + attention_mask
    present_key_value_state = None   # use_cache=False
    return layer_output, present_key_value_state, position_bias


def _reference_forward(hidden_states, key_value_states, attention_mask,
                       delete_gate_mask, params):
    """Pure-JAX fp32 reference mirroring the PyTorch forward (eval mode)."""
    x32 = hidden_states.astype(jnp.float32)
    var = jnp.mean(x32 * x32, axis=-1, keepdims=True)
    normed = params["ln_w"][0] * (x32 * jax.lax.rsqrt(var + LN_EPS))

    B, Lq, _ = hidden_states.shape
    Lk = key_value_states.shape[1]
    q = (normed @ params["wq"]).reshape(B, Lq, N_HEADS, D_KV).transpose(0, 2, 1, 3)
    k = (key_value_states @ params["wk"]).reshape(B, Lk, N_HEADS, D_KV).transpose(0, 2, 1, 3)
    v = (key_value_states @ params["wv"]).reshape(B, Lk, N_HEADS, D_KV).transpose(0, 2, 1, 3)

    scores = jnp.einsum("bhqd,bhkd->bhqk", q, k)
    position_bias = jnp.zeros((1, N_HEADS, Lq, Lk), jnp.float32) + attention_mask
    scores = scores + position_bias
    scores = scores + jnp.squeeze(delete_gate_mask, -1)[:, None, None, :]
    w = jax.nn.softmax(scores.astype(jnp.float32), axis=-1)
    attn = jnp.einsum("bhqk,bhkd->bhqd", w, v)
    attn = attn.transpose(0, 2, 1, 3).reshape(B, Lq, INNER_DIM)
    attn_out = attn @ params["wo"]
    return hidden_states + attn_out


if __name__ == "__main__":
    key = jax.random.PRNGKey(0)
    ks = jax.random.split(key, 10)

    # deterministic synthetic parameters (T5 linears have no bias)
    params = {
        "ln_w": (1.0 + 0.05 * jax.random.normal(ks[0], (1, D_MODEL))).astype(jnp.float32),
        "wq": (0.05 * jax.random.normal(ks[1], (D_MODEL, INNER_DIM))).astype(jnp.float32),
        "wk": (0.05 * jax.random.normal(ks[2], (D_MODEL, INNER_DIM))).astype(jnp.float32),
        "wv": (0.05 * jax.random.normal(ks[3], (D_MODEL, INNER_DIM))).astype(jnp.float32),
        "wo": (0.05 * jax.random.normal(ks[4], (INNER_DIM, D_MODEL))).astype(jnp.float32),
    }

    hidden_states = jax.random.normal(ks[5], (BATCH, LQ, D_MODEL), jnp.float32)
    key_value_states = jax.random.normal(ks[6], (BATCH, LK, D_MODEL), jnp.float32)

    # extended additive attention mask (B, 1, 1, Lk): last 3 encoder positions
    # of batch 1 are masked out
    valid = jnp.ones((BATCH, LK), jnp.float32).at[1, -3:].set(0.0)
    attention_mask = ((1.0 - valid) * -1e9)[:, None, None, :]

    # delete-gate mask (B, Lk, 1): sigmoid_mask_scale * sigmoid(gate) <= 0
    delete_gate_mask = (-10.0 * jax.nn.sigmoid(
        jax.random.normal(ks[7], (BATCH, LK, 1), jnp.float32)))

    fwd = jax.jit(mrt5_layer_cross_attention)
    layer_out, present_kv, pos_bias = fwd(
        hidden_states, key_value_states, attention_mask, delete_gate_mask, params)
    layer_out = jax.block_until_ready(layer_out)

    ref = _reference_forward(hidden_states, key_value_states, attention_mask,
                             delete_gate_mask, params)
    assert layer_out.shape == (BATCH, LQ, D_MODEL)
    # tolerance: matmul operands are bf16 on the MXU (fp32 accumulation)
    assert jnp.allclose(layer_out, ref, atol=1e-2, rtol=1e-2), "mismatch vs reference"
    assert present_kv is None
    assert pos_bias.shape == (BATCH, N_HEADS, LQ, LK)

    print("KERNEL_OK")
</pallas_src>

<mosaic_0001>
module attributes {stable_mosaic.version = 11 : i64} {
  func.func @_cross_attn_kernel(%arg0: memref<16x32xf32, #tpu.memory_space<vmem>>, %arg1: memref<32x32xf32, #tpu.memory_space<vmem>>, %arg2: memref<2x16xf32, #tpu.memory_space<vmem>>, %arg3: memref<32x128xbf16, #tpu.memory_space<vmem>>, %arg4: memref<16x32xf32, #tpu.memory_space<vmem>>) attributes {dimension_semantics = [], scalar_prefetch = 0 : i64, scratch_operands = 0 : i64, tpu.core_type = #tpu.core_type<tc>} {
    %c0 = arith.constant 0 : index
    %c0_0 = arith.constant 0 : index
    %0 = vector.load %arg0[%c0, %c0_0] : memref<16x32xf32, #tpu.memory_space<vmem>>, vector<16x32xf32>
    %c0_1 = arith.constant 0 : index
    %c0_2 = arith.constant 0 : index
    %1 = vector.load %arg1[%c0_1, %c0_2] : memref<32x32xf32, #tpu.memory_space<vmem>>, vector<32x32xf32>
    %c0_3 = arith.constant 0 : index
    %c0_4 = arith.constant 0 : index
    %2 = vector.load %arg3[%c0_3, %c0_4] : memref<32x128xbf16, #tpu.memory_space<vmem>>, vector<32x128xbf16>
    %3 = vector.extract_strided_slice %2 {offsets = [0, 0], sizes = [32, 32], strides = [1, 1]} : vector<32x128xbf16> to vector<32x32xbf16>
    %4 = vector.extract_strided_slice %2 {offsets = [0, 32], sizes = [32, 64], strides = [1, 1]} : vector<32x128xbf16> to vector<32x64xbf16>
    %5 = vector.extract_strided_slice %2 {offsets = [0, 96], sizes = [32, 32], strides = [1, 1]} : vector<32x128xbf16> to vector<32x32xbf16>
    %6 = arith.mulf %0, %0 : vector<16x32xf32>
    %cst = arith.constant dense<0.000000e+00> : vector<16xf32>
    %7 = vector.multi_reduction <add>, %6, %cst [1] : vector<16x32xf32> to vector<16xf32>
    %8 = vector.shape_cast %7 : vector<16xf32> to vector<16x1xf32>
    %cst_5 = arith.constant 3.200000e+01 : f32
    %9 = vector.broadcast %cst_5 : f32 to vector<16x1xf32>
    %10 = arith.divf %8, %9 : vector<16x1xf32>
    %cst_6 = arith.constant 9.99999997E-7 : f32
    %11 = vector.broadcast %cst_6 : f32 to vector<16x1xf32>
    %12 = arith.addf %10, %11 : vector<16x1xf32>
    %13 = math.rsqrt %12 : vector<16x1xf32>
    %14 = vector.broadcast %13 : vector<16x1xf32> to vector<16x32xf32>
    %15 = arith.mulf %0, %14 : vector<16x32xf32>
    %16 = arith.truncf %15 : vector<16x32xf32> to vector<16x32xbf16>
    %cst_7 = arith.constant dense<0.000000e+00> : vector<16x32xf32>
    %17 = tpu.matmul %16, %3, %cst_7 {dimension_numbers = #tpu.dot_dimension_numbers<[1], [0], [0], [1], [0, 0, 1, 1], [], []>} : vector<16x32xbf16>, vector<32x32xbf16>, vector<16x32xf32> -> vector<16x32xf32>
    %18 = arith.truncf %1 : vector<32x32xf32> to vector<32x32xbf16>
    %cst_8 = arith.constant dense<0.000000e+00> : vector<32x64xf32>
    %19 = tpu.matmul %18, %4, %cst_8 {dimension_numbers = #tpu.dot_dimension_numbers<[1], [0], [0], [1], [0, 0, 1, 1], [], []>} : vector<32x32xbf16>, vector<32x64xbf16>, vector<32x64xf32> -> vector<32x64xf32>
    %20 = vector.extract_strided_slice %17 {offsets = [0, 0], sizes = [16, 8], strides = [1, 1]} : vector<16x32xf32> to vector<16x8xf32>
    %21 = vector.shape_cast %20 : vector<16x8xf32> to vector<2x8x8xf32>
    %22 = vector.extract_strided_slice %17 {offsets = [0, 8], sizes = [16, 8], strides = [1, 1]} : vector<16x32xf32> to vector<16x8xf32>
    %23 = vector.shape_cast %22 : vector<16x8xf32> to vector<2x8x8xf32>
    %24 = vector.extract_strided_slice %17 {offsets = [0, 16], sizes = [16, 8], strides = [1, 1]} : vector<16x32xf32> to vector<16x8xf32>
    %25 = vector.shape_cast %24 : vector<16x8xf32> to vector<2x8x8xf32>
    %26 = vector.extract_strided_slice %17 {offsets = [0, 24], sizes = [16, 8], strides = [1, 1]} : vector<16x32xf32> to vector<16x8xf32>
    %27 = vector.shape_cast %26 : vector<16x8xf32> to vector<2x8x8xf32>
    %28 = tpu.concatenate %21, %23, %25, %27 in 0 : vector<2x8x8xf32>, vector<2x8x8xf32>, vector<2x8x8xf32>, vector<2x8x8xf32> -> vector<8x8x8xf32>
    %29 = arith.truncf %28 : vector<8x8x8xf32> to vector<8x8x8xbf16>
    %30 = vector.extract_strided_slice %19 {offsets = [0, 0], sizes = [32, 8], strides = [1, 1]} : vector<32x64xf32> to vector<32x8xf32>
    %31 = vector.shape_cast %30 : vector<32x8xf32> to vector<2x16x8xf32>
    %32 = vector.extract_strided_slice %19 {offsets = [0, 8], sizes = [32, 8], strides = [1, 1]} : vector<32x64xf32> to vector<32x8xf32>
    %33 = vector.shape_cast %32 : vector<32x8xf32> to vector<2x16x8xf32>
    %34 = vector.extract_strided_slice %19 {offsets = [0, 16], sizes = [32, 8], strides = [1, 1]} : vector<32x64xf32> to vector<32x8xf32>
    %35 = vector.shape_cast %34 : vector<32x8xf32> to vector<2x16x8xf32>
    %36 = vector.extract_strided_slice %19 {offsets = [0, 24], sizes = [32, 8], strides = [1, 1]} : vector<32x64xf32> to vector<32x8xf32>
    %37 = vector.shape_cast %36 : vector<32x8xf32> to vector<2x16x8xf32>
    %38 = tpu.concatenate %31, %33, %35, %37 in 0 : vector<2x16x8xf32>, vector<2x16x8xf32>, vector<2x16x8xf32>, vector<2x16x8xf32> -> vector<8x16x8xf32>
    %39 = arith.truncf %38 : vector<8x16x8xf32> to vector<8x16x8xbf16>
    %40 = vector.extract_strided_slice %19 {offsets = [0, 32], sizes = [32, 8], strides = [1, 1]} : vector<32x64xf32> to vector<32x8xf32>
    %41 = vector.shape_cast %40 : vector<32x8xf32> to vector<2x16x8xf32>
    %42 = vector.extract_strided_slice %19 {offsets = [0, 40], sizes = [32, 8], strides = [1, 1]} : vector<32x64xf32> to vector<32x8xf32>
    %43 = vector.shape_cast %42 : vector<32x8xf32> to vector<2x16x8xf32>
    %44 = vector.extract_strided_slice %19 {offsets = [0, 48], sizes = [32, 8], strides = [1, 1]} : vector<32x64xf32> to vector<32x8xf32>
    %45 = vector.shape_cast %44 : vector<32x8xf32> to vector<2x16x8xf32>
    %46 = vector.extract_strided_slice %19 {offsets = [0, 56], sizes = [32, 8], strides = [1, 1]} : vector<32x64xf32> to vector<32x8xf32>
    %47 = vector.shape_cast %46 : vector<32x8xf32> to vector<2x16x8xf32>
    %48 = tpu.concatenate %41, %43, %45, %47 in 0 : vector<2x16x8xf32>, vector<2x16x8xf32>, vector<2x16x8xf32>, vector<2x16x8xf32> -> vector<8x16x8xf32>
    %49 = arith.truncf %48 : vector<8x16x8xf32> to vector<8x16x8xbf16>
    "tpu.trace_start"() <{level = 10 : i32, message = "bqd,bkd->bqk"}> : () -> ()
    %cst_9 = arith.constant dense<0.000000e+00> : vector<8x8x16xf32>
    %50 = tpu.matmul %29, %39, %cst_9 {dimension_numbers = #tpu.dot_dimension_numbers<[2], [2], [1], [1], [0, 0, 0, 1, 1, 1], [0], [0]>} : vector<8x8x8xbf16>, vector<8x16x8xbf16>, vector<8x8x16xf32> -> vector<8x8x16xf32>
    "tpu.trace_stop"() : () -> ()
    %c0_10 = arith.constant 0 : index
    %c0_11 = arith.constant 0 : index
    %51 = vector.load %arg2[%c0_10, %c0_11] : memref<2x16xf32, #tpu.memory_space<vmem>>, vector<2x16xf32>
    %52 = vector.shape_cast %51 : vector<2x16xf32> to vector<2x1x16xf32>
    %53 = vector.shape_cast %52 : vector<2x1x16xf32> to vector<2x1x16xf32>
    %54 = vector.broadcast %53 : vector<2x1x16xf32> to vector<2x8x16xf32>
    %55 = tpu.concatenate %54, %54, %54, %54 in 0 : vector<2x8x16xf32>, vector<2x8x16xf32>, vector<2x8x16xf32>, vector<2x8x16xf32> -> vector<8x8x16xf32>
    %56 = arith.addf %50, %55 : vector<8x8x16xf32>
    %cst_12 = arith.constant dense<0xFF800000> : vector<8x8xf32>
    %57 = vector.multi_reduction <maximumf>, %56, %cst_12 [2] : vector<8x8x16xf32> to vector<8x8xf32>
    %58 = vector.shape_cast %57 : vector<8x8xf32> to vector<8x8x1xf32>
    %59 = vector.broadcast %58 : vector<8x8x1xf32> to vector<8x8x16xf32>
    %60 = arith.subf %56, %59 : vector<8x8x16xf32>
    %61 = math.exp %60 : vector<8x8x16xf32>
    %cst_13 = arith.constant dense<0.000000e+00> : vector<8x8xf32>
    %62 = vector.multi_reduction <add>, %61, %cst_13 [2] : vector<8x8x16xf32> to vector<8x8xf32>
    %63 = vector.shape_cast %62 : vector<8x8xf32> to vector<8x8x1xf32>
    %64 = vector.broadcast %63 : vector<8x8x1xf32> to vector<8x8x16xf32>
    %65 = arith.divf %61, %64 : vector<8x8x16xf32>
    %66 = arith.truncf %65 : vector<8x8x16xf32> to vector<8x8x16xbf16>
    "tpu.trace_start"() <{level = 10 : i32, message = "bqk,bkd->bqd"}> : () -> ()
    %cst_14 = arith.constant dense<0.000000e+00> : vector<8x8x8xf32>
    %67 = tpu.matmul %66, %49, %cst_14 {dimension_numbers = #tpu.dot_dimension_numbers<[2], [1], [1], [2], [0, 0, 0, 1, 1, 2], [0], [0]>} : vector<8x8x16xbf16>, vector<8x16x8xbf16>, vector<8x8x8xf32> -> vector<8x8x8xf32>
    "tpu.trace_stop"() : () -> ()
    %68 = vector.extract_strided_slice %67 {offsets = [0, 0, 0], sizes = [2, 8, 8], strides = [1, 1, 1]} : vector<8x8x8xf32> to vector<2x8x8xf32>
    %69 = vector.shape_cast %68 : vector<2x8x8xf32> to vector<16x8xf32>
    %70 = vector.extract_strided_slice %67 {offsets = [2, 0, 0], sizes = [2, 8, 8], strides = [1, 1, 1]} : vector<8x8x8xf32> to vector<2x8x8xf32>
    %71 = vector.shape_cast %70 : vector<2x8x8xf32> to vector<16x8xf32>
    %72 = vector.extract_strided_slice %67 {offsets = [4, 0, 0], sizes = [2, 8, 8], strides = [1, 1, 1]} : vector<8x8x8xf32> to vector<2x8x8xf32>
    %73 = vector.shape_cast %72 : vector<2x8x8xf32> to vector<16x8xf32>
    %74 = vector.extract_strided_slice %67 {offsets = [6, 0, 0], sizes = [2, 8, 8], strides = [1, 1, 1]} : vector<8x8x8xf32> to vector<2x8x8xf32>
    %75 = vector.shape_cast %74 : vector<2x8x8xf32> to vector<16x8xf32>
    %76 = tpu.concatenate %69, %71, %73, %75 in 1 : vector<16x8xf32>, vector<16x8xf32>, vector<16x8xf32>, vector<16x8xf32> -> vector<16x32xf32>
    %77 = arith.truncf %76 : vector<16x32xf32> to vector<16x32xbf16>
    %cst_15 = arith.constant dense<0.000000e+00> : vector<16x32xf32>
    %78 = tpu.matmul %77, %5, %cst_15 {dimension_numbers = #tpu.dot_dimension_numbers<[1], [0], [0], [1], [0, 0, 1, 1], [], []>} : vector<16x32xbf16>, vector<32x32xbf16>, vector<16x32xf32> -> vector<16x32xf32>
    %79 = arith.addf %0, %78 : vector<16x32xf32>
    %c0_16 = arith.constant 0 : index
    %c0_17 = arith.constant 0 : index
    %80 = vector.load %arg4[%c0_16, %c0_17] : memref<16x32xf32, #tpu.memory_space<vmem>>, vector<16x32xf32>
    tpu.vector_store %arg4[%c0_16, %c0_17], %79 {strides = array<i32>} : memref<16x32xf32, #tpu.memory_space<vmem>>, vector<16x32xf32>,
    return
  }
}

</mosaic_0001>

<bundles_post_ra>
// kernel: mrt5_layer_cross_attention.1
= control target key start
LH: loop header
LB: loop body
LE: loop exit
PB: predicated region body
PF: predicated region fallthrough
CT: control target
= control target key end

     0   :  { %vm30_vm0 = vcmask 261120   ;;  %s1502_s21 = smov 96   ;;  %v1503_v11 = vmov 0.0   ;;  %vm1504_vm1 = vmmov 0   ;;  %vm276_vm2 = vcmask 64512   ;;  %s1506_s30 = smov 112   ;;  %s1773_s0 = inlined_call_operand.vmem [shape: f32[16,32], index: 0, kind: input, shape index: {}, may-alias: {0,4}]   ;;  %s1774_s3 = inlined_call_operand.vmem [shape: bf16[32,128], index: 3, kind: input, shape index: {}]   ;;  %s1775_s1 = inlined_call_operand.vmem [shape: f32[32,32], index: 1, kind: input, shape index: {}]   ;;  %s1776_s2 = inlined_call_operand.vmem [shape: f32[2,16], index: 2, kind: input, shape index: {}]   ;;  %s1777_s4 = inlined_call_operand.vmem [shape: f32[16,32], index: 4, kind: output, shape index: {}, may-alias: {0,4}]  }
   0x1   :  { %v1541_v0 = vld [vmem:[%s1773_s0] sm:$0xff]  ;;  %v1546_v1 = vld [vmem:[%s1773_s0 + $0x8] sm:$0xff]  ;;  %1273 = vmatprep.subr.bf16.mxu0 %v1503_v11  ;;  %1277 = vmatprep.mubr.msk.bf16.mxu0 %vm1504_vm1, %v1503_v11  ;;  %v22_v13 = vld [vmem:[%s1775_s1 + $0x10] sm:$0xff]  ;;  %s1507_s5 = smov 104   ;;  %vm645_vm3 = vcmask 130048   ;;  %s1510_s8 = smov 8  }
   0x2   :  { %v28_v2 = vmul.f32 %v1541_v0, %v1541_v0  ;;  %v29_v3 = vmul.f32 %v1546_v1, %v1546_v1  ;;  %v1555_v4 = vld [vmem:[%s1774_s3] sm:$0xff]   ;;  %v1563_v6 = vld [vmem:[%s1774_s3 + $0x8] sm:$0xff]   ;;  %v23_v14 = vld [vmem:[%s1775_s1 + $0x18] sm:$0xff]  ;;  %s1511_s9 = smov 16   ;;  %s1512_s10 = smov 24   ;;  %vm1146_vm4 = vcmask 195584  }
   0x3   :  { %105 = vrot.lane.b32.xlu1 %v1555_v4, %s1502_s21  ;;  %v20_v8 = vld [vmem:[%s1775_s1] sm:$0xff]  ;;  %v21_v9 = vld [vmem:[%s1775_s1 + $0x8] sm:$0xff]  ;;  %1274 = vmatpush3.bf16.msra.mxu0 %v1555_v4  ;;  %v104_v16 = vpack.c.bf16 %v23_v14, %v22_v13  ;;  %s1505_s1 = smov 120  }
   0x4   :  { %v31_v5 = vsel %vm30_vm0, %v28_v2, 0.0  ;;  %v34_v7 = vsel %vm30_vm0, %v29_v3, 0.0  ;;  %v103_v10 = vpack.c.bf16 %v21_v9, %v20_v8  ;;  %1275 = vmatprep.subr.bf16.mxu0 %v1503_v11 }
   0x5   :  { %32 = vadd.xlane.f32.xlu0 %v31_v5 }
   0x6   :  { %1285 = vmatprep.mubr.msk.bf16.mxu1 %vm30_vm0, %v103_v10 }
   0x7   :  { %107 = vrot.lane.b32.xlu1 %v1563_v6, %s1502_s21  ;;  %1276 = vmatpush3.bf16.msra.mxu0 %v1563_v6 }
   0x8   :  { %1289 = vmatprep.subr.bf16.mxu0 %v1503_v11 }
   0x9   :  { %35 = vadd.xlane.f32.xlu0 %v34_v7 }
  0x75   :  { %v106_v12 = vpop.permute.xlu1 %105 }
  0x76   :  { %1281 = vmatprep.subr.bf16.mxu1 %v106_v12 }
  0x77   :  { %1282 = vmatpush3.bf16.msra.mxu1 %v106_v12 }
  0x79   :  { %v108_v15 = vpop.permute.xlu1 %107 }
  0x7a   :  { %1283 = vmatprep.subr.bf16.mxu1 %v108_v15 }
  0x7b   :  { %1284 = vmatpush3.bf16.msra.mxu1 %v108_v15 }
  0x7c   :  { %1295 = vmatprep.subr.bf16.mxu1 %v1503_v11 }
  0x7e   :  { %1286 = vmatmul.mubr.msk.bf16.vlgmr.msra.gmra.mrb[0].mxu1 %vm30_vm0, %v104_v16 }
  0x7f   :  { %1297 = vmatprep.mubr.msk.bf16.mxu1 %vm1504_vm1, %v1503_v11 }
  0x92   :  { %v33_v17 = vpop.xlane.xlu0 %32 }
  0x93   :  { %v38_v18 = vmul.f32 0.03125, %v33_v17 }
  0x95   :  { %v40_v19 = vadd.f32 1e-06, %v38_v18 }
  0x96   :  { %v36_v20 = vpop.xlane.xlu0 %35 }
  0x97   :  { %v39_v21 = vmul.f32 0.03125, %v36_v20  ;;  %1466 = vrsqrt.f32 %v40_v19 }
  0x99   :  { %v41_v22 = vadd.f32 1e-06, %v39_v21 }
  0x9b   :  { %1468 = vrsqrt.f32 %v41_v22 }
  0xa1   :  { %v1467_v23 = vpop.eup %1466 }
  0xa2   :  { %v44_v25 = vmul.f32 %v1467_v23, %v1541_v0 }
  0xa5   :  { %v1469_v24 = vpop.eup %1468 }
  0xa6   :  { %v45_v26 = vmul.f32 %v1469_v24, %v1546_v1 }
  0xa8   :  { %v46_v27 = vpack.c.bf16 %v45_v26, %v44_v25 }
  0xaa   :  { %1278 = vmatmul.mubr.msk.bf16.vlgmr.msra.gmra.mrb[0].mxu0 %vm30_vm0, %v46_v27 }
  0xab   :  { %1291 = vmatprep.mubr.msk.bf16.mxu0 %vm1504_vm1, %v1503_v11 }
 0x151   :  { %v1287_v28 = vpop.f32.mrb[0].mxu1 }
 0x152   :  { %v151_v29 = vpop.f32.mrb[1].mxu1 }
 0x153   :  { %v1288_v30 = vpop.f32.mrb[2].mxu1 }
 0x154   :  { %v1409_v31 = vpack.i.bf16 %v1288_v30, %v1287_v28  ;;  %v154_v32 = vpop.f32.mrb[3].mxu1  ;;  %v1597_v33 = vpack.c.bf16 %v1288_v30, %v1287_v28 }
 0x155   :  { %v1404_v34 = vpack.i.bf16 %v154_v32, %v151_v29  ;;  %v234_v35 = vpack.c.bf16 %v154_v32, %v151_v29  ;;  %v1508_v32 = vmov 1966171168  }
 0x156   :  { %1410 = vrot.lane.b32.xlu1 %v1409_v31, %s1505_s1  ;;  %v327_v36 = vsel %vm276_vm2, %v1597_v33, 0 }
 0x157   :  { %1405 = vrot.lane.b32.xlu0 %v1404_v34, %s1505_s1  ;;  %v281_v37 = vsel %vm276_vm2, %v234_v35, 0  ;;  %1296 = vmatpush3.bf16.xpose.msra.mxu1 %v327_v36 }
 0x158   :  { %1290 = vmatpush3.bf16.xpose.msra.mxu0 %v281_v37  ;;  %1307 = vmatprep.subr.bf16.mxu1 %v1503_v11 }
 0x159   :  { %1301 = vmatprep.subr.bf16.mxu0 %v1503_v11 }
 0x15a   :  { %1415 = vrot.lane.b32.xlu1 %v1409_v31, %s1506_s30 }
 0x15b   :  { %1440 = vrot.lane.b32.xlu0 %v1409_v31, %s1507_s5 }
 0x15e   :  { %1420 = vrot.lane.b32.xlu1 %v1404_v34, %s1506_s30 }
 0x17d   :  { %v96_v38 = vpop.f32.mrb[0].mxu0 }
 0x17e   :  { %v186_v39 = vpack.c.bf16 %v96_v38, %v96_v38  ;;  %v1279_v40 = vpop.f32.mrb[1].mxu0 }
 0x17f   :  { %v99_v41 = vpop.f32.mrb[2].mxu0 }
 0x180   :  { %v187_v42 = vpack.c.bf16 %v99_v41, %v99_v41  ;;  %v1280_v43 = vpop.f32.mrb[3].mxu0  ;;  %1292 = vmatmul.mubr.msk.bf16.vlgmr.msra.gmra.mrb[4].mxu0 %vm276_vm2, %v186_v39  ;;  %v1424_v44 = vpack.i.bf16 %v99_v41, %v96_v38  ;;  %v1213_v38 = vld.sshfl [vmem:[%s1776_s2] sm:$0x11 pattern:$0x75316420]  ;;  %s1509_s2 = smov 32  }
 0x181   :  { %1303 = vmatprep.mubr.msk.bf16.mxu0 %vm1504_vm1, %v1503_v11  ;;  %v251_v40 = vcombine.high %v1213_v38, %v1213_v38 }
 0x182   :  { %1425 = vrot.lane.b32.xlu1 %v1424_v44, %s1505_s1  ;;  %1298 = vmatmul.mubr.msk.bf16.vlgmr.msra.gmra.mrb[4].mxu1 %vm276_vm2, %v187_v42 }
 0x183   :  { %1309 = vmatprep.mubr.msk.bf16.mxu1 %vm1504_vm1, %v1503_v11 }
 0x186   :  { %1430 = vrot.lane.b32.xlu1 %v1424_v44, %s1506_s30 }
 0x18a   :  { %1435 = vrot.lane.b32.xlu1 %v1404_v34, %s1507_s5  ;;  %v253_v34 = vunpack.c.l.s4 %v1508_v32 }
 0x18c   :  { %v254_v36 = vunpack.c.0.s8 %v253_v34 }
 0x18e   :  { %1445 = vrot.lane.b32.xlu1 %v1424_v44, %s1507_s5 }
 0x192   :  { %743 = vrot.lane.b32.xlu1 %v234_v35, %s1502_s21  ;;  %v255_v35 = vlaneseq }
 0x194   :  { %v256_v37 = vshrl.u32 %v255_v35, 7 }
 0x196   :  { %v257_v39 = vsub.s32 %v254_v36, %v256_v37  ;;  %v268_v42 = vsub.s32 0, %v256_v37 }
 0x198   :  { %v258_v41 = vrot.slane %v1213_v38, %v257_v39  ;;  %v265_v43 = vrot.slane %v251_v40, %v257_v39 }
 0x19a   :  { %v269_v44 = vrot.slane %v258_v41, %v268_v42 }
 0x1c8   :  { %v1411_v45 = vpop.permute.xlu1 %1410 }
 0x1c9   :  { %v1413_v46 = vunpack.i.h.bf16 %v1411_v45  ;;  %v1412_v47 = vunpack.i.l.bf16 %v1411_v45  ;;  %v1406_v48 = vpop.permute.xlu0 %1405  ;;  %v273_v45 = vrot.slane %v265_v43, %v268_v42 }
 0x1ca   :  { %v1408_v49 = vunpack.i.h.bf16 %v1406_v48  ;;  %v1407_v50 = vunpack.i.l.bf16 %v1406_v48 }
 0x1cb   :  { %v1611_v51 = vpack.c.bf16 %v1413_v46, %v1412_v47 }
 0x1cc   :  { %v1613_v52 = vpack.c.bf16 %v1408_v49, %v1407_v50  ;;  %v1416_v55 = vpop.permute.xlu1 %1415 }
 0x1cd   :  { %v419_v53 = vsel %vm276_vm2, %v1611_v51, 0  ;;  %v1418_v57 = vunpack.i.h.bf16 %v1416_v55  ;;  %v1417_v58 = vunpack.i.l.bf16 %v1416_v55  ;;  %v1441_v5 = vpop.permute.xlu0 %1440 }
 0x1ce   :  { %v373_v54 = vsel %vm276_vm2, %v1613_v52, 0  ;;  %1308 = vmatpush3.bf16.xpose.msra.mxu1 %v419_v53  ;;  %v1443_v10 = vunpack.i.h.bf16 %v1441_v5  ;;  %v1442_v12 = vunpack.i.l.bf16 %v1441_v5 }
 0x1cf   :  { %1302 = vmatpush3.bf16.xpose.msra.mxu0 %v373_v54  ;;  %1319 = vmatprep.subr.bf16.mxu1 %v1503_v11  ;;  %v1621_v62 = vpack.c.bf16 %v1418_v57, %v1417_v58 }
 0x1d0   :  { %1313 = vmatprep.subr.bf16.mxu0 %v1503_v11  ;;  %v1421_v56 = vpop.permute.xlu1 %1420  ;;  %v1637_v18 = vpack.c.bf16 %v1443_v10, %v1442_v12 }
 0x1d1   :  { %v1423_v59 = vunpack.i.h.bf16 %v1421_v56  ;;  %v1422_v60 = vunpack.i.l.bf16 %v1421_v56  ;;  %v511_v14 = vsel %vm276_vm2, %v1621_v62, 0 }
 0x1d2   :  { %v603_v25 = vsel %vm276_vm2, %v1637_v18, 0 }
 0x1d3   :  { %v1623_v63 = vpack.c.bf16 %v1423_v59, %v1422_v60 }
 0x1d5   :  { %v465_v13 = vsel %vm276_vm2, %v1623_v63, 0 }
 0x1f4   :  { %v1426_v61 = vpop.permute.xlu1 %1425 }
 0x1f5   :  { %v1428_v2 = vunpack.i.h.bf16 %v1426_v61  ;;  %v1427_v3 = vunpack.i.l.bf16 %v1426_v61 }
 0x1f7   :  { %v189_v7 = vpack.c.bf16 %v1428_v2, %v1428_v2  ;;  %v188_v8 = vpack.c.bf16 %v1427_v3, %v1427_v3 }
 0x1f8   :  { %v1431_v9 = vpop.permute.xlu1 %1430 }
 0x1f9   :  { %1304 = vmatmul.mubr.msk.bf16.vlgmr.msra.gmra.mrb[8].mxu0 %vm276_vm2, %v188_v8  ;;  %1310 = vmatmul.mubr.msk.bf16.vlgmr.msra.gmra.mrb[8].mxu1 %vm276_vm2, %v189_v7  ;;  %v1433_v15 = vunpack.i.h.bf16 %v1431_v9  ;;  %v1432_v16 = vunpack.i.l.bf16 %v1431_v9 }
 0x1fa   :  { %1314 = vmatpush3.bf16.xpose.msra.mxu0 %v465_v13  ;;  %1320 = vmatpush3.bf16.xpose.msra.mxu1 %v511_v14 }
 0x1fb   :  { %1315 = vmatprep.mubr.msk.bf16.mxu0 %vm1504_vm1, %v1503_v11  ;;  %1321 = vmatprep.mubr.msk.bf16.mxu1 %vm1504_vm1, %v1503_v11  ;;  %v191_v21 = vpack.c.bf16 %v1433_v15, %v1433_v15  ;;  %v190_v22 = vpack.c.bf16 %v1432_v16, %v1432_v16 }
 0x1fc   :  { %v1436_v17 = vpop.permute.xlu1 %1435  ;;  %1331 = vmatprep.subr.bf16.mxu1 %v1503_v11  ;;  %1325 = vmatprep.subr.bf16.mxu0 %v1503_v11 }
 0x1fd   :  { %v1438_v19 = vunpack.i.h.bf16 %v1436_v17  ;;  %v1437_v20 = vunpack.i.l.bf16 %v1436_v17 }
 0x1ff   :  { %v1639_v23 = vpack.c.bf16 %v1438_v19, %v1437_v20 }
 0x200   :  { %v1446_v24 = vpop.permute.xlu1 %1445 }
 0x201   :  { %1316 = vmatmul.mubr.msk.bf16.vlgmr.msra.gmra.mrb[12].mxu0 %vm276_vm2, %v190_v22  ;;  %1322 = vmatmul.mubr.msk.bf16.vlgmr.msra.gmra.mrb[12].mxu1 %vm276_vm2, %v191_v21  ;;  %v557_v26 = vsel %vm276_vm2, %v1639_v23, 0  ;;  %v1448_v27 = vunpack.i.h.bf16 %v1446_v24  ;;  %v1447_v28 = vunpack.i.l.bf16 %v1446_v24 }
 0x202   :  { %1332 = vmatpush3.bf16.xpose.msra.mxu1 %v603_v25  ;;  %1326 = vmatpush3.bf16.xpose.msra.mxu0 %v557_v26 }
 0x203   :  { %1327 = vmatprep.mubr.msk.bf16.mxu0 %vm1504_vm1, %v1503_v11  ;;  %1333 = vmatprep.mubr.msk.bf16.mxu1 %vm1504_vm1, %v1503_v11  ;;  %v193_v29 = vpack.c.bf16 %v1448_v27, %v1448_v27  ;;  %v192_v30 = vpack.c.bf16 %v1447_v28, %v1447_v28 }
 0x204   :  { %1337 = vmatprep.subr.bf16.mxu0 %v1503_v11  ;;  %1343 = vmatprep.subr.bf16.mxu1 %v1503_v11  ;;  %v744_v31 = vpop.permute.xlu1 %743 }
 0x209   :  { %1328 = vmatmul.mubr.msk.bf16.vlgmr.msra.gmra.mrb[16].mxu0 %vm276_vm2, %v192_v30  ;;  %1334 = vmatmul.mubr.msk.bf16.vlgmr.msra.gmra.mrb[16].mxu1 %vm276_vm2, %v193_v29 }
 0x20a   :  { %1338 = vmatpush3.bf16.msra.mxu0 %v744_v31  ;;  %1345 = vmatprep.mubr.msk.bf16.mxu1 %vm1504_vm1, %v1503_v11 }
 0x20b   :  { %1339 = vmatprep.mubr.msk.bf16.mxu0 %vm1504_vm1, %v1503_v11  ;;  %1349 = vmatprep.subr.bf16.mxu0 %v1503_v11 }
 0x253   :  { %v317_v46 = vpop.f32.mrb[4].mxu0 }
 0x254   :  { %v1663_v47 = vadd.f32 %v317_v46, %v269_v44  ;;  %v1293_v48 = vpop.f32.mrb[5].mxu0 }
 0x255   :  { %v320_v49 = vpop.f32.mrb[6].mxu0  ;;  %v363_v50 = vpop.f32.mrb[4].mxu1 }
 0x256   :  { %v364_v53 = vadd.f32 %v363_v50, %v273_v45  ;;  %v1294_v54 = vpop.f32.mrb[7].mxu0  ;;  %v1299_v55 = vpop.f32.mrb[5].mxu1  ;;  %v646_v56 = vsel %vm645_vm3, %v1663_v47, -inf }
 0x257   :  { %v366_v57 = vpop.f32.mrb[6].mxu1  ;;  %647 = vmax.xlane.f32.xlu0 %v646_v56 }
 0x258   :  { %v1300_v58 = vpop.f32.mrb[7].mxu1  ;;  %v649_v59 = vsel %vm645_vm3, %v364_v53, -inf }
 0x259   :  { %650 = vmax.xlane.f32.xlu1 %v649_v59 }
 0x2cc   :  { %v409_v60 = vpop.f32.mrb[8].mxu0  ;;  %v455_v61 = vpop.f32.mrb[8].mxu1 }
 0x2cd   :  { %v410_v2 = vadd.f32 %v409_v60, %v269_v44  ;;  %v1305_v3 = vpop.f32.mrb[9].mxu0  ;;  %v1311_v5 = vpop.f32.mrb[9].mxu1  ;;  %v456_v9 = vadd.f32 %v455_v61, %v273_v45 }
 0x2ce   :  { %v412_v7 = vpop.f32.mrb[10].mxu0  ;;  %v458_v8 = vpop.f32.mrb[10].mxu1 }
 0x2cf   :  { %v1306_v10 = vpop.f32.mrb[11].mxu0  ;;  %v1312_v12 = vpop.f32.mrb[11].mxu1  ;;  %v652_v13 = vsel %vm645_vm3, %v410_v2, -inf  ;;  %v655_v14 = vsel %vm645_vm3, %v456_v9, -inf }
 0x2d0   :  { %653 = vmax.xlane.f32.xlu0 %v652_v13 }
 0x2d4   :  { %v547_v15 = vpop.f32.mrb[12].mxu1  ;;  %656 = vmax.xlane.f32.xlu0 %v655_v14  ;;  %v501_v16 = vpop.f32.mrb[12].mxu0 }
 0x2d5   :  { %v1670_v17 = vadd.f32 %v547_v15, %v273_v45  ;;  %v1672_v19 = vadd.f32 %v501_v16, %v269_v44  ;;  %v1317_v20 = vpop.f32.mrb[13].mxu0  ;;  %v1323_v21 = vpop.f32.mrb[13].mxu1 }
 0x2d6   :  { %v504_v22 = vpop.f32.mrb[14].mxu0  ;;  %v550_v24 = vpop.f32.mrb[14].mxu1 }
 0x2d7   :  { %v1318_v25 = vpop.f32.mrb[15].mxu0  ;;  %v1324_v26 = vpop.f32.mrb[15].mxu1  ;;  %v661_v27 = vsel %vm645_vm3, %v1670_v17, -inf  ;;  %v658_v28 = vsel %vm645_vm3, %v1672_v19, -inf }
 0x2d8   :  { %662 = vmax.xlane.f32.xlu0 %v661_v27  ;;  %659 = vmax.xlane.f32.xlu1 %v658_v28 }
 0x2dc   :  { %v593_v29 = vpop.f32.mrb[16].mxu0  ;;  %v639_v30 = vpop.f32.mrb[16].mxu1 }
 0x2dd   :  { %v594_v31 = vadd.f32 %v593_v29, %v269_v44  ;;  %v640_v32 = vadd.f32 %v639_v30, %v273_v45  ;;  %v1329_v34 = vpop.f32.mrb[17].mxu0  ;;  %v1335_v35 = vpop.f32.mrb[17].mxu1 }
 0x2de   :  { %v596_v36 = vpop.f32.mrb[18].mxu0  ;;  %v642_v37 = vpop.f32.mrb[18].mxu1 }
 0x2df   :  { %v1330_v38 = vpop.f32.mrb[19].mxu0  ;;  %v1336_v39 = vpop.f32.mrb[19].mxu1  ;;  %v667_v40 = vsel %vm645_vm3, %v640_v32, -inf  ;;  %v664_v41 = vsel %vm645_vm3, %v594_v31, -inf }
 0x2e0   :  { %668 = vmax.xlane.f32.xlu0 %v667_v40  ;;  %665 = vmax.xlane.f32.xlu1 %v664_v41 }
 0x2e4   :  { %v648_v44 = vpop.xlane.xlu0 %647 }
 0x2e5   :  { %v670_v45 = vsub.f32 %v1663_v47, %v648_v44 }
 0x2e6   :  { %v651_v42 = vpop.xlane.xlu1 %650 }
 0x2e7   :  { %v671_v43 = vsub.f32 %v364_v53, %v651_v42  ;;  %v678_v48 = vmul.f32 1.442695, %v670_v45 }
 0x2e9   :  { %v680_v46 = vmul.f32 1.442695, %v671_v43 }
 0x2eb   :  { %1470 = vpow2.f32 %v680_v46 }
 0x2ec   :  { %1472 = vpow2.f32 %v678_v48 }
 0x2f1   :  { %837 = vrot.lane.b32.xlu1 %v1613_v52, %s1502_s21 }
 0x2f5   :  { %884 = vrot.lane.b32.xlu1 %v1611_v51, %s1502_s21  ;;  %v1471_v49 = vpop.eup %1470 }
 0x2f6   :  { %790 = vrot.lane.b32.xlu0 %v1597_v33, %s1502_s21  ;;  %v697_v50 = vsel %vm645_vm3, %v1471_v49, 0.0  ;;  %v1473_v54 = vpop.eup %1472 }
 0x2f7   :  { %v694_v52 = vsel %vm645_vm3, %v1473_v54, 0.0 }
 0x315   :  { %698 = vadd.xlane.f32.xlu0 %v697_v50 }
 0x319   :  { %695 = vadd.xlane.f32.xlu1 %v694_v52 }
 0x35d   :  { %v654_v51 = vpop.xlane.xlu0 %653 }
 0x35e   :  { %v672_v55 = vsub.f32 %v410_v2, %v654_v51 }
 0x360   :  { %v682_v33 = vmul.f32 1.442695, %v672_v55 }
 0x361   :  { %v657_v56 = vpop.xlane.xlu0 %656 }
 0x362   :  { %1474 = vpow2.f32 %v682_v33  ;;  %v673_v53 = vsub.f32 %v456_v9, %v657_v56 }
 0x364   :  { %v684_v57 = vmul.f32 1.442695, %v673_v53 }
 0x365   :  { %v663_v47 = vpop.xlane.xlu0 %662  ;;  %v660_v5 = vpop.xlane.xlu1 %659 }
 0x366   :  { %1476 = vpow2.f32 %v684_v57  ;;  %v674_v7 = vsub.f32 %v1672_v19, %v660_v5  ;;  %v675_v9 = vsub.f32 %v1670_v17, %v663_v47 }
 0x368   :  { %v686_v10 = vmul.f32 1.442695, %v674_v7  ;;  %v688_v13 = vmul.f32 1.442695, %v675_v9 }
 0x36a   :  { %1478 = vpow2.f32 %v686_v10 }
 0x36b   :  { %1480 = vpow2.f32 %v688_v13 }
 0x36c   :  { %v1689_v58 = vpop.eup %1474 }
 0x36d   :  { %v669_v59 = vpop.xlane.xlu0 %668  ;;  %v700_v60 = vsel %vm645_vm3, %v1689_v58, 0.0  ;;  %v666_v8 = vpop.xlane.xlu1 %665 }
 0x36e   :  { %701 = vadd.xlane.f32.xlu1 %v700_v60  ;;  %v676_v12 = vsub.f32 %v594_v31, %v666_v8  ;;  %v677_v14 = vsub.f32 %v640_v32, %v669_v59 }
 0x370   :  { %v1693_v61 = vpop.eup %1476  ;;  %v690_v15 = vmul.f32 1.442695, %v676_v12  ;;  %v692_v16 = vmul.f32 1.442695, %v677_v14 }
 0x371   :  { %v791_v3 = vpop.permute.xlu0 %790  ;;  %v703_v2 = vsel %vm645_vm3, %v1693_v61, 0.0  ;;  %v838_v20 = vpop.permute.xlu1 %837 }
 0x372   :  { %704 = vadd.xlane.f32.xlu0 %v703_v2  ;;  %1344 = vmatpush3.bf16.msra.mxu1 %v791_v3  ;;  %1482 = vpow2.f32 %v690_v15 }
 0x373   :  { %1355 = vmatprep.subr.bf16.mxu1 %v1503_v11  ;;  %1484 = vpow2.f32 %v692_v16 }
 0x37f   :  { %978 = vrot.lane.b32.xlu1 %v1621_v62, %s1502_s21  ;;  %v1479_v62 = vpop.eup %1478 }
 0x380   :  { %v1704_v21 = vpop.eup %1480  ;;  %v706_v19 = vsel %vm645_vm3, %v1479_v62, 0.0 }
 0x381   :  { %v1707_v24 = vpop.eup %1482  ;;  %v709_v25 = vsel %vm645_vm3, %v1704_v21, 0.0 }
 0x382   :  { %v712_v26 = vsel %vm645_vm3, %v1707_v24, 0.0  ;;  %v1713_v27 = vpop.eup %1484 }
 0x383   :  { %v715_v28 = vsel %vm645_vm3, %v1713_v27, 0.0 }
 0x388   :  { %931 = vrot.lane.b32.xlu0 %v1623_v63, %s1502_s21  ;;  %v885_v63 = vpop.permute.xlu1 %884 }
 0x3a2   :  { %v699_v22 = vpop.xlane.xlu0 %698 }
 0x3a3   :  { %1486 = vrcp.f32 %v699_v22  ;;  %707 = vadd.xlane.f32.xlu1 %v706_v19 }
 0x3a6   :  { %v696_v17 = vpop.xlane.xlu1 %695 }
 0x3a7   :  { %1488 = vrcp.f32 %v696_v17  ;;  %710 = vadd.xlane.f32.xlu0 %v709_v25  ;;  %713 = vadd.xlane.f32.xlu1 %v712_v26 }
 0x3ab   :  { %716 = vadd.xlane.f32.xlu0 %v715_v28 }
 0x3ad   :  { %v1487_v29 = vpop.eup %1486 }
 0x3ae   :  { %v721_v30 = vmul.f32 %v1487_v29, %v1471_v49 }
 0x3b0   :  { %v735_v31 = vpack.c.bf16 %v721_v30, %v721_v30 }
 0x3b1   :  { %v1489_v32 = vpop.eup %1488 }
 0x3b2   :  { %v719_v34 = vmul.f32 %v1489_v32, %v1473_v54  ;;  %1346 = vmatmul.mubr.msk.bf16.vlgmr.msra.gmra.mrb[20].mxu1 %vm645_vm3, %v735_v31 }
 0x3b3   :  { %1356 = vmatpush3.bf16.msra.mxu1 %v885_v63  ;;  %1357 = vmatprep.mubr.msk.bf16.mxu1 %vm1504_vm1, %v1503_v11 }
 0x3b4   :  { %v734_v35 = vpack.c.bf16 %v719_v34, %v719_v34  ;;  %1367 = vmatprep.subr.bf16.mxu1 %v1503_v11 }
 0x3b6   :  { %1340 = vmatmul.mubr.msk.bf16.vlgmr.msra.gmra.mrb[20].mxu0 %vm645_vm3, %v734_v35 }
 0x3b7   :  { %1350 = vmatpush3.bf16.msra.mxu0 %v838_v20  ;;  %1351 = vmatprep.mubr.msk.bf16.mxu0 %vm1504_vm1, %v1503_v11 }
 0x3b8   :  { %1072 = vrot.lane.b32.xlu1 %v1637_v18, %s1502_s21  ;;  %1361 = vmatprep.subr.bf16.mxu0 %v1503_v11 }
 0x3c1   :  { %1025 = vrot.lane.b32.xlu0 %v1639_v23, %s1502_s21 }
 0x3c5   :  { %1150 = vrot.lane.b32.xlu0 %v1555_v4, %s1509_s2 }
 0x3fb   :  { %v702_v36 = vpop.xlane.xlu1 %701 }
 0x3fc   :  { %1490 = vrcp.f32 %v702_v36 }
 0x3ff   :  { %v705_v37 = vpop.xlane.xlu0 %704  ;;  %v979_v23 = vpop.permute.xlu1 %978 }
 0x400   :  { %1492 = vrcp.f32 %v705_v37 }
 0x403   :  { %v932_v43 = vpop.permute.xlu0 %931 }
 0x406   :  { %v1491_v38 = vpop.eup %1490 }
 0x407   :  { %v723_v39 = vmul.f32 %v1491_v38, %v1689_v58 }
 0x409   :  { %v736_v40 = vpack.c.bf16 %v723_v39, %v723_v39 }
 0x40a   :  { %v1493_v41 = vpop.eup %1492 }
 0x40b   :  { %v725_v42 = vmul.f32 %v1493_v41, %v1693_v61  ;;  %1352 = vmatmul.mubr.msk.bf16.vlgmr.msra.gmra.mrb[24].mxu0 %vm645_vm3, %v736_v40 }
 0x40c   :  { %1362 = vmatpush3.bf16.msra.mxu0 %v932_v43  ;;  %1363 = vmatprep.mubr.msk.bf16.mxu0 %vm1504_vm1, %v1503_v11 }
 0x40d   :  { %v737_v18 = vpack.c.bf16 %v725_v42, %v725_v42  ;;  %1373 = vmatprep.subr.bf16.mxu0 %v1503_v11 }
 0x40f   :  { %1358 = vmatmul.mubr.msk.bf16.vlgmr.msra.gmra.mrb[24].mxu1 %vm645_vm3, %v737_v18 }
 0x410   :  { %1368 = vmatpush3.bf16.msra.mxu1 %v979_v23  ;;  %1369 = vmatprep.mubr.msk.bf16.mxu1 %vm1504_vm1, %v1503_v11 }
 0x411   :  { %1379 = vmatprep.subr.bf16.mxu1 %v1503_v11 }
 0x430   :  { %v708_v44 = vpop.xlane.xlu1 %707 }
 0x431   :  { %1494 = vrcp.f32 %v708_v44 }
 0x434   :  { %v711_v45 = vpop.xlane.xlu0 %710  ;;  %v714_v46 = vpop.xlane.xlu1 %713 }
 0x435   :  { %1496 = vrcp.f32 %v711_v45 }
 0x436   :  { %1498 = vrcp.f32 %v714_v46 }
 0x438   :  { %v717_v48 = vpop.xlane.xlu0 %716  ;;  %v1073_v47 = vpop.permute.xlu1 %1072 }
 0x439   :  { %1500 = vrcp.f32 %v717_v48 }
 0x43b   :  { %v1495_v49 = vpop.eup %1494 }
 0x43c   :  { %v727_v50 = vmul.f32 %v1495_v49, %v1479_v62  ;;  %v1026_v33 = vpop.permute.xlu0 %1025 }
 0x43e   :  { %v738_v54 = vpack.c.bf16 %v727_v50, %v727_v50 }
 0x43f   :  { %v1497_v52 = vpop.eup %1496 }
 0x440   :  { %v1499_v51 = vpop.eup %1498  ;;  %v729_v55 = vmul.f32 %v1497_v52, %v1704_v21  ;;  %1364 = vmatmul.mubr.msk.bf16.vlgmr.msra.gmra.mrb[28].mxu0 %vm645_vm3, %v738_v54  ;;  %v1151_v22 = vpop.permute.xlu0 %1150 }
 0x441   :  { %1374 = vmatpush3.bf16.msra.mxu0 %v1026_v33  ;;  %1375 = vmatprep.mubr.msk.bf16.mxu0 %vm1504_vm1, %v1503_v11  ;;  %v731_v56 = vmul.f32 %v1499_v51, %v1707_v24 }
 0x442   :  { %v739_v53 = vpack.c.bf16 %v729_v55, %v729_v55  ;;  %1385 = vmatprep.subr.bf16.mxu0 %v1503_v11 }
 0x443   :  { %v1501_v57 = vpop.eup %1500  ;;  %v740_v59 = vpack.c.bf16 %v731_v56, %v731_v56 }
 0x444   :  { %1370 = vmatmul.mubr.msk.bf16.vlgmr.msra.gmra.mrb[28].mxu1 %vm645_vm3, %v739_v53  ;;  %v733_v58 = vmul.f32 %v1501_v57, %v1713_v27 }
 0x445   :  { %1380 = vmatpush3.bf16.msra.mxu1 %v1073_v47  ;;  %1381 = vmatprep.mubr.msk.bf16.mxu1 %vm1504_vm1, %v1503_v11 }
 0x446   :  { %v741_v60 = vpack.c.bf16 %v733_v58, %v733_v58 }
 0x448   :  { %1376 = vmatmul.mubr.msk.bf16.vlgmr.msra.gmra.mrb[32].mxu0 %vm645_vm3, %v740_v59 }
 0x449   :  { %1389 = vmatprep.mubr.msk.bf16.mxu0 %vm1504_vm1, %v1503_v11  ;;  %1386 = vmatpush3.bf16.msra.mxu0 %v1151_v22 }
 0x44a   :  { %1387 = vmatprep.subr.bf16.mxu0 %v1503_v11 }
 0x44c   :  { %1382 = vmatmul.mubr.msk.bf16.vlgmr.msra.gmra.mrb[32].mxu1 %vm645_vm3, %v741_v60 }
 0x485   :  { %v830_v61 = vpop.f32.mrb[20].mxu1 }
 0x486   :  { %v1347_v3 = vpop.f32.mrb[21].mxu1 }
 0x487   :  { %v833_v2 = vpop.f32.mrb[22].mxu1 }
 0x488   :  { %v1348_v5 = vpop.f32.mrb[23].mxu1 }
 0x489   :  { %v783_v7 = vpop.f32.mrb[20].mxu0 }
 0x48a   :  { %v1341_v8 = vpop.f32.mrb[21].mxu0 }
 0x48b   :  { %v786_v9 = vpop.f32.mrb[22].mxu0 }
 0x48c   :  { %v1342_v10 = vpop.f32.mrb[23].mxu0 }
 0x4de   :  { %v877_v12 = vpop.f32.mrb[24].mxu0 }
 0x4df   :  { %v1353_v13 = vpop.f32.mrb[25].mxu0 }
 0x4e0   :  { %v880_v14 = vpop.f32.mrb[26].mxu0 }
 0x4e1   :  { %v1354_v15 = vpop.f32.mrb[27].mxu0 }
 0x4e2   :  { %v924_v16 = vpop.f32.mrb[24].mxu1 }
 0x4e3   :  { %v1449_v20 = vpack.i.bf16 %v924_v16, %v877_v12  ;;  %v1359_v62 = vpop.f32.mrb[25].mxu1 }
 0x4e4   :  { %v927_v21 = vpop.f32.mrb[26].mxu1 }
 0x4e5   :  { %v1360_v63 = vpop.f32.mrb[27].mxu1  ;;  %1450 = vrot.lane.b32.xlu1 %v1449_v20, %s1510_s8 }
 0x513   :  { %v971_v19 = vpop.f32.mrb[28].mxu0 }
 0x514   :  { %v1365_v24 = vpop.f32.mrb[29].mxu0 }
 0x515   :  { %v974_v17 = vpop.f32.mrb[30].mxu0 }
 0x516   :  { %v1366_v25 = vpop.f32.mrb[31].mxu0 }
 0x517   :  { %v1018_v4 = vpop.f32.mrb[28].mxu1 }
 0x518   :  { %v1454_v26 = vpack.i.bf16 %v1018_v4, %v971_v19  ;;  %v1371_v27 = vpop.f32.mrb[29].mxu1 }
 0x519   :  { %v1021_v28 = vpop.f32.mrb[30].mxu1 }
 0x51a   :  { %v1372_v29 = vpop.f32.mrb[31].mxu1  ;;  %1455 = vrot.lane.b32.xlu0 %v1454_v26, %s1511_s9 }
 0x51b   :  { %v1065_v30 = vpop.f32.mrb[32].mxu0 }
 0x51c   :  { %v1377_v31 = vpop.f32.mrb[33].mxu0 }
 0x51d   :  { %v1068_v32 = vpop.f32.mrb[34].mxu0 }
 0x51e   :  { %v1378_v34 = vpop.f32.mrb[35].mxu0  ;;  %1152 = vrot.lane.b32.xlu0 %v1563_v6, %s1509_s2 }
 0x51f   :  { %v1112_v35 = vpop.f32.mrb[32].mxu1 }
 0x520   :  { %v1459_v11 = vpack.i.bf16 %v1112_v35, %v1065_v30  ;;  %v1383_v36 = vpop.f32.mrb[33].mxu1 }
 0x521   :  { %v1115_v37 = vpop.f32.mrb[34].mxu1 }
 0x522   :  { %v1384_v38 = vpop.f32.mrb[35].mxu1  ;;  %1460 = vrot.lane.b32.xlu1 %v1459_v11, %s1512_s10 }
 0x557   :  { %v1451_v40 = vpop.permute.xlu1 %1450 }
 0x558   :  { %v1453_v42 = vunpack.i.h.bf16 %v1451_v40  ;;  %v1452_v43 = vunpack.i.l.bf16 %v1451_v40 }
 0x55a   :  { %v1143_v45 = vsel %vm276_vm2, %v830_v61, %v1453_v42  ;;  %v1142_v6 = vsel %vm276_vm2, %v783_v7, %v1452_v43 }
 0x58c   :  { %v1456_v39 = vpop.permute.xlu0 %1455 }
 0x58d   :  { %v1458_v18 = vunpack.i.h.bf16 %v1456_v39  ;;  %v1457_v23 = vunpack.i.l.bf16 %v1456_v39 }
 0x58f   :  { %v1145_v49 = vsel %vm645_vm3, %v1143_v45, %v1458_v18  ;;  %v1144_v50 = vsel %vm645_vm3, %v1142_v6, %v1457_v23 }
 0x590   :  { %v1153_v41 = vpop.permute.xlu0 %1152 }
 0x591   :  { %1388 = vmatpush3.bf16.msra.mxu0 %v1153_v41 }
 0x594   :  { %v1461_v44 = vpop.permute.xlu1 %1460 }
 0x595   :  { %v1463_v46 = vunpack.i.h.bf16 %v1461_v44  ;;  %v1462_v48 = vunpack.i.l.bf16 %v1461_v44 }
 0x597   :  { %v1148_v54 = vsel %vm1146_vm4, %v1145_v49, %v1463_v46  ;;  %v1147_v52 = vsel %vm1146_vm4, %v1144_v50, %v1462_v48 }
 0x598   :  { %v1149_v51 = vpack.c.bf16 %v1148_v54, %v1147_v52 }
 0x59a   :  { %1390 = vmatmul.mubr.msk.bf16.vlgmr.msra.gmra.mrb[36].mxu0 %vm30_vm0, %v1149_v51 }
 0x66d   :  { %v1193_v55 = vpop.f32.mrb[36].mxu0 }
 0x66e   :  { %v1200_v33 = vadd.f32 %v1193_v55, %v1541_v0  ;;  %v1391_v56 = vpop.f32.mrb[37].mxu0 }
 0x66f   :  { %v1196_v53 = vpop.f32.mrb[38].mxu0 }
 0x670   :  { %1202 = vst.msk [vmem:[%s1777_s4] sm:$0xff] %vm30_vm0, %v1200_v33  ;;  %v1201_v57 = vadd.f32 %v1196_v53, %v1546_v1  ;;  %v1392_v47 = vpop.f32.mrb[39].mxu0 }
 0x672   :  { %1203 = vst.msk [vmem:[%s1777_s4 + $0x8] sm:$0xff] %vm30_vm0, %v1201_v57 }

</bundles_post_ra>
